<compile_context>
chip_gen: v7x
topology: tpu7x:2x2x1
jax: 0.10.0
libtpu: 0.0.40
codegen_flags: <defaults>
</compile_context>

<pallas_src>
import functools

import jax
import jax.numpy as jnp
import numpy as np
from jax.experimental import pallas as pl
from jax.experimental.pallas import tpu as pltpu

NEG_SLOPE = 0.01   # PyTorch LeakyReLU default negative_slope
BN_EPS = 1e-5
KH = 3             # 3x3 convs, padding=1
PACK = 2           # batch images packed along the lane dimension (-> 128 lanes)


# ------------------------------ Pallas kernel --------------------------------

def _conv_bn_lrelu(rpad_ref, w_ref, scale, bias, *, n_rows, stride):
    """3x3 conv + folded BN affine + LeakyReLU as ONE banded matmul.

    rpad_ref : (H+2, L) f32 VMEM scratch; rows 0 and H+1 hold the zero H-halo.
    w_ref    : (KH*L, Lo) bf16 packed block-Toeplitz weight.
    scale/bias: (1, Lo) f32 folded BatchNorm affine (tiled across W and pack).
    Returns (n_rows, Lo) f32.  The H conv-stride is applied via strided sublane
    reads; the W conv-stride is baked into w_ref.
    """
    taps = []
    for kh in range(KH):
        if stride == 1:
            taps.append(rpad_ref[pl.ds(kh, n_rows), :])
        else:
            # TODO(synk): if a bundle dump shows XLU relayouts for these strided
            # sublane reads, compute all H rows densely and subselect the even
            # rows once at the store instead (MXU has plenty of slack here).
            taps.append(rpad_ref[pl.ds(kh, n_rows, stride), :])
    rows = jnp.concatenate(taps, axis=-1).astype(jnp.bfloat16)   # (n_rows, KH*L)
    acc = jnp.dot(rows, w_ref[...], preferred_element_type=jnp.float32)
    y = acc * scale + bias
    return jnp.where(y > 0, y, NEG_SLOPE * y)


def fused_recurrent_kernel(x_ref,
                           w1_ref, s1_ref, b1_ref,
                           w2_ref, s2_ref, b2_ref,
                           w3_ref, s3_ref, b3_ref,
                           w4_ref, s4_ref, b4_ref,
                           o_ref, rpad_ref, *, H, stride4):
    """out = conv4(x1 + conv3(x1)), x1 = conv2(x + conv1(x)); one image pair."""
    L = rpad_ref.shape[-1]

    # Zero only the two halo rows (interior rows are fully overwritten below).
    zrow = jnp.zeros((1, L), jnp.float32)
    rpad_ref[pl.ds(0, 1), :] = zrow
    rpad_ref[pl.ds(H + 1, 1), :] = zrow

    x = x_ref[0].astype(jnp.float32)                              # (H, L)

    # conv1 (stride 1) + residual add, all in VMEM / f32.
    rpad_ref[pl.ds(1, H), :] = x
    y1 = _conv_bn_lrelu(rpad_ref, w1_ref, s1_ref[...], b1_ref[...],
                        n_rows=H, stride=1)
    # conv2 (stride 1) -> x1 (never leaves VMEM).
    rpad_ref[pl.ds(1, H), :] = x + y1
    x1 = _conv_bn_lrelu(rpad_ref, w2_ref, s2_ref[...], b2_ref[...],
                        n_rows=H, stride=1)
    # conv3 (stride 1) + residual add.
    rpad_ref[pl.ds(1, H), :] = x1
    y3 = _conv_bn_lrelu(rpad_ref, w3_ref, s3_ref[...], b3_ref[...],
                        n_rows=H, stride=1)
    # conv4 (stride 1 or 2): H stride via strided sublane reads, W stride baked
    # into the packed weight; only the kept Ho rows are computed and stored.
    rpad_ref[pl.ds(1, H), :] = x1 + y3
    ho = (H - 1) // stride4 + 1
    y4 = _conv_bn_lrelu(rpad_ref, w4_ref, s4_ref[...], b4_ref[...],
                        n_rows=ho, stride=stride4)
    o_ref[0] = y4.astype(o_ref.dtype)


def _fused_call(x_pk, packed, *, H, stride4):
    """x_pk: (NP, H, PACK*W*Cin) bf16 -> (NP, Ho, PACK*Wo*Cout) f32."""
    (w1, s1, b1), (w2, s2, b2), (w3, s3, b3), (w4, s4, b4) = packed
    NP, _, L_in = x_pk.shape
    ho = (H - 1) // stride4 + 1
    L_out = w4.shape[-1]
    const2 = lambda n: (0, 0)
    kern = functools.partial(fused_recurrent_kernel, H=H, stride4=stride4)
    return pl.pallas_call(
        kern,
        out_shape=jax.ShapeDtypeStruct((NP, ho, L_out), jnp.float32),
        grid_spec=pltpu.PrefetchScalarGridSpec(
            num_scalar_prefetch=0,
            grid=(NP,),
            in_specs=[
                pl.BlockSpec((1, H, L_in), lambda n: (n, 0, 0)),
                pl.BlockSpec(w1.shape, const2), pl.BlockSpec(s1.shape, const2),
                pl.BlockSpec(b1.shape, const2),
                pl.BlockSpec(w2.shape, const2), pl.BlockSpec(s2.shape, const2),
                pl.BlockSpec(b2.shape, const2),
                pl.BlockSpec(w3.shape, const2), pl.BlockSpec(s3.shape, const2),
                pl.BlockSpec(b3.shape, const2),
                pl.BlockSpec(w4.shape, const2), pl.BlockSpec(s4.shape, const2),
                pl.BlockSpec(b4.shape, const2),
            ],
            out_specs=pl.BlockSpec((1, ho, L_out), lambda n: (n, 0, 0)),
            scratch_shapes=[pltpu.VMEM((H + 2, L_in), jnp.float32)],
        ),
        compiler_params=pltpu.CompilerParams(
            dimension_semantics=("parallel",)),
    )(x_pk, w1, s1, b1, w2, s2, b2, w3, s3, b3, w4, s4, b4)


# --------------------------- host-side weight packing ------------------------

def _pack_weight(w_hwio, W, stride, pack):
    """(3,3,Cin,Cout) HWIO -> (KH*pack*W*Cin, pack*Wo*Cout) bf16 packed weight.

    Encodes the W taps, the W zero padding, the W conv-stride and the pack
    block-diagonal; the H taps/stride/padding are handled in-kernel.
    K layout matches concat([tap_kh0, tap_kh1, tap_kh2], axis=-1) with lane
    layout [pack][w][cin]; output lane layout is [pack][wo][cout].
    """
    w = np.asarray(w_hwio, dtype=np.float32)
    kh_, kw_, cin, cout = w.shape
    wo = (W + 2 - kw_) // stride + 1
    kin, kout = W * cin, wo * cout
    T = np.zeros((kh_, kin, kout), np.float32)
    for kh in range(kh_):
        for ow in range(wo):
            for kw in range(kw_):
                wi = stride * ow - 1 + kw
                if 0 <= wi < W:
                    T[kh, wi * cin:(wi + 1) * cin,
                      ow * cout:(ow + 1) * cout] = w[kh, kw]
    big = np.zeros((kh_ * pack * kin, pack * kout), np.float32)
    for kh in range(kh_):
        for p in range(pack):
            big[(kh * pack + p) * kin:(kh * pack + p + 1) * kin,
                p * kout:(p + 1) * kout] = T[kh]
    return jnp.asarray(big, dtype=jnp.bfloat16)


def _pack_affine(scale, bias, wo, pack):
    """Per-channel (Cout,) scale/bias -> (1, pack*Wo*Cout) rows (channel-minor)."""
    s = np.tile(np.asarray(scale, np.float32), wo * pack)[None, :]
    b = np.tile(np.asarray(bias, np.float32), wo * pack)[None, :]
    return jnp.asarray(s), jnp.asarray(b)


# --------------------------------- JAX glue ----------------------------------

def recurrent_block(x_nchw, convs, t=2, downsample=True):
    """convs: 4 tuples (w_hwio (3,3,Cin,Cout), bn_scale (Cout,), bn_bias (Cout,)).

    For t >= 2 the PyTorch module's result is independent of t (every i >= 1
    iteration recomputes x2 from the unchanged x1), so the fused kernel
    evaluates the recurrence exactly once.
    """
    if t < 2:
        raise ValueError("Recurrent_block forward requires t >= 2 (x2 is only "
                         "produced in the i >= 1 branch).")
    x = jnp.transpose(x_nchw, (0, 2, 3, 1)).astype(jnp.float32)     # NCHW -> NHWC
    N, H, W, Cin = x.shape
    (w1, s1, b1), (w2, s2, b2), (w3, s3, b3), (w4, s4, b4) = convs
    Cout = w4.shape[-1]
    stride4 = 2 if downsample else 1
    Ho = (H - 1) // stride4 + 1
    Wo = (W - 1) // stride4 + 1

    # Pack pairs of batch images along the lane dimension (lane-dense: 128).
    n_pad = (-N) % PACK
    if n_pad:
        x = jnp.concatenate([x, jnp.zeros((n_pad,) + x.shape[1:], x.dtype)], 0)
    NP = x.shape[0] // PACK
    x_pk = (x.reshape(NP, PACK, H, W * Cin)
              .transpose(0, 2, 1, 3)
              .reshape(NP, H, PACK * W * Cin)
              .astype(jnp.bfloat16))      # bf16 input halves the HBM->VMEM DMA

    packed = [
        (_pack_weight(w1, W, 1, PACK),) + _pack_affine(s1, b1, W, PACK),
        (_pack_weight(w2, W, 1, PACK),) + _pack_affine(s2, b2, W, PACK),
        (_pack_weight(w3, W, 1, PACK),) + _pack_affine(s3, b3, W, PACK),
        (_pack_weight(w4, W, stride4, PACK),) + _pack_affine(s4, b4, Wo, PACK),
    ]

    out = _fused_call(x_pk, packed, H=H, stride4=stride4)   # (NP, Ho, PACK*Wo*Cout)
    out = (out.reshape(NP, Ho, PACK, Wo, Cout)
              .transpose(0, 2, 1, 3, 4)
              .reshape(NP * PACK, Ho, Wo, Cout))[:N]
    return jnp.transpose(out, (0, 3, 1, 2))                          # NHWC -> NCHW


# ----------------------------- pure-JAX reference ----------------------------

def _ref_conv_block(x_nhwc, w_hwio, scale, bias, stride):
    y = jax.lax.conv_general_dilated(
        x_nhwc, w_hwio, window_strides=(stride, stride), padding=((1, 1), (1, 1)),
        dimension_numbers=('NHWC', 'HWIO', 'NHWC'))
    y = y * scale.reshape(1, 1, 1, -1) + bias.reshape(1, 1, 1, -1)
    return jnp.where(y > 0, y, NEG_SLOPE * y)


def ref_recurrent(x_nchw, convs, t=2, downsample=True):
    x = jnp.transpose(x_nchw, (0, 2, 3, 1))
    (w1, s1, b1), (w2, s2, b2), (w3, s3, b3), (w4, s4, b4) = convs
    x1 = x2 = None
    for i in range(t):
        if i == 0:
            x1 = _ref_conv_block(x, w1, s1, b1, 1)
            x1 = _ref_conv_block(x + x1, w2, s2, b2, 1)
        else:
            x2 = _ref_conv_block(x1, w3, s3, b3, 1)
            x2 = _ref_conv_block(x1 + x2, w4, s4, b4, 2 if downsample else 1)
    return jnp.transpose(x2, (0, 3, 1, 2))


# ------------------------------------ main -----------------------------------

def _make_conv_params(key, cin, cout):
    kw, kb, kg, kbe = jax.random.split(key, 4)
    w = 0.1 * jax.random.normal(kw, (3, 3, cin, cout), jnp.float32)   # HWIO
    conv_b = 0.1 * jax.random.normal(kb, (cout,), jnp.float32)
    gamma = 1.0 + 0.1 * jax.random.normal(kg, (cout,), jnp.float32)
    beta = 0.1 * jax.random.normal(kbe, (cout,), jnp.float32)
    run_mean = jnp.zeros((cout,), jnp.float32)
    run_var = jnp.ones((cout,), jnp.float32)
    # eval-mode BatchNorm folded to per-channel scale/bias (conv bias folded in)
    scale = gamma / jnp.sqrt(run_var + BN_EPS)
    bias = beta + scale * (conv_b - run_mean)
    return w, scale, bias


if __name__ == "__main__":
    N, Cin, Cout, H, W = 2, 4, 8, 16, 16
    key = jax.random.PRNGKey(0)
    keys = jax.random.split(key, 8)

    convs = [
        _make_conv_params(keys[0], Cin, Cin),   # conv1
        _make_conv_params(keys[1], Cin, Cin),   # conv2
        _make_conv_params(keys[2], Cin, Cin),   # conv3
        _make_conv_params(keys[3], Cin, Cout),  # conv4
    ]
    x = jax.random.normal(keys[4], (N, Cin, H, W), jnp.float32)  # NCHW like PyTorch

    # downsample=True (stride-2 conv4)
    out = jax.block_until_ready(recurrent_block(x, convs, t=2, downsample=True))
    ref = ref_recurrent(x, convs, t=2, downsample=True)
    assert out.shape == (N, Cout, H // 2, W // 2), out.shape
    np.testing.assert_allclose(np.asarray(out), np.asarray(ref), rtol=2e-2, atol=2e-2)

    # downsample=False (stride-1 conv4) path
    out2 = jax.block_until_ready(recurrent_block(x, convs, t=2, downsample=False))
    ref2 = ref_recurrent(x, convs, t=2, downsample=False)
    assert out2.shape == (N, Cout, H, W), out2.shape
    np.testing.assert_allclose(np.asarray(out2), np.asarray(ref2), rtol=2e-2, atol=2e-2)

    print("KERNEL_OK")
</pallas_src>

<mosaic_0001>
module attributes {stable_mosaic.version = 11 : i64} {
  func.func @fused_recurrent_kernel(%arg0: i32, %arg1: memref<1x16x128xbf16, #tpu.memory_space<vmem>>, %arg2: memref<384x128xbf16, #tpu.memory_space<vmem>>, %arg3: memref<1x128xf32, #tpu.memory_space<vmem>>, %arg4: memref<1x128xf32, #tpu.memory_space<vmem>>, %arg5: memref<384x128xbf16, #tpu.memory_space<vmem>>, %arg6: memref<1x128xf32, #tpu.memory_space<vmem>>, %arg7: memref<1x128xf32, #tpu.memory_space<vmem>>, %arg8: memref<384x128xbf16, #tpu.memory_space<vmem>>, %arg9: memref<1x128xf32, #tpu.memory_space<vmem>>, %arg10: memref<1x128xf32, #tpu.memory_space<vmem>>, %arg11: memref<384x128xbf16, #tpu.memory_space<vmem>>, %arg12: memref<1x128xf32, #tpu.memory_space<vmem>>, %arg13: memref<1x128xf32, #tpu.memory_space<vmem>>, %arg14: memref<1x8x128xf32, #tpu.memory_space<vmem>>, %arg15: memref<18x128xf32, #tpu.memory_space<vmem>>) attributes {dimension_semantics = [#tpu.dimension_semantics<parallel>], iteration_bounds = array<i64: 1>, scalar_prefetch = 0 : i64, scratch_operands = 1 : i64, tpu.core_type = #tpu.core_type<tc>, window_params = [{transform_indices = @transform_0, window_bounds = array<i64: 1, 16, 128>}, {pipeline_mode = #tpu.pipeline_mode<synchronous>, transform_indices = @transform_1, window_bounds = array<i64: 384, 128>}, {pipeline_mode = #tpu.pipeline_mode<synchronous>, transform_indices = @transform_2, window_bounds = array<i64: 1, 128>}, {pipeline_mode = #tpu.pipeline_mode<synchronous>, transform_indices = @transform_3, window_bounds = array<i64: 1, 128>}, {pipeline_mode = #tpu.pipeline_mode<synchronous>, transform_indices = @transform_4, window_bounds = array<i64: 384, 128>}, {pipeline_mode = #tpu.pipeline_mode<synchronous>, transform_indices = @transform_5, window_bounds = array<i64: 1, 128>}, {pipeline_mode = #tpu.pipeline_mode<synchronous>, transform_indices = @transform_6, window_bounds = array<i64: 1, 128>}, {pipeline_mode = #tpu.pipeline_mode<synchronous>, transform_indices = @transform_7, window_bounds = array<i64: 384, 128>}, {pipeline_mode = #tpu.pipeline_mode<synchronous>, transform_indices = @transform_8, window_bounds = array<i64: 1, 128>}, {pipeline_mode = #tpu.pipeline_mode<synchronous>, transform_indices = @transform_9, window_bounds = array<i64: 1, 128>}, {pipeline_mode = #tpu.pipeline_mode<synchronous>, transform_indices = @transform_10, window_bounds = array<i64: 384, 128>}, {pipeline_mode = #tpu.pipeline_mode<synchronous>, transform_indices = @transform_11, window_bounds = array<i64: 1, 128>}, {pipeline_mode = #tpu.pipeline_mode<synchronous>, transform_indices = @transform_12, window_bounds = array<i64: 1, 128>}, {transform_indices = @transform_13, window_bounds = array<i64: 1, 8, 128>}]} {
    %cst = arith.constant 0.000000e+00 : f32
    %0 = vector.broadcast %cst : f32 to vector<1x128xf32>
    %c0 = arith.constant 0 : index
    %c0_0 = arith.constant 0 : index
    %1 = vector.load %arg15[%c0, %c0_0] : memref<18x128xf32, #tpu.memory_space<vmem>>, vector<1x128xf32>
    tpu.vector_store %arg15[%c0, %c0_0], %0 {strides = array<i32>} : memref<18x128xf32, #tpu.memory_space<vmem>>, vector<1x128xf32>,
    %c17 = arith.constant 17 : index
    %c0_1 = arith.constant 0 : index
    %2 = vector.load %arg15[%c17, %c0_1] : memref<18x128xf32, #tpu.memory_space<vmem>>, vector<1x128xf32>
    tpu.vector_store %arg15[%c17, %c0_1], %0 {strides = array<i32>} : memref<18x128xf32, #tpu.memory_space<vmem>>, vector<1x128xf32>,
    %c0_2 = arith.constant 0 : index
    %c0_3 = arith.constant 0 : index
    %c0_4 = arith.constant 0 : index
    %3 = vector.load %arg1[%c0_2, %c0_3, %c0_4] : memref<1x16x128xbf16, #tpu.memory_space<vmem>>, vector<1x16x128xbf16>
    %4 = vector.shape_cast %3 : vector<1x16x128xbf16> to vector<16x128xbf16>
    %5 = arith.extf %4 : vector<16x128xbf16> to vector<16x128xf32>
    %c1 = arith.constant 1 : index
    %c0_5 = arith.constant 0 : index
    %6 = vector.load %arg15[%c1, %c0_5] : memref<18x128xf32, #tpu.memory_space<vmem>>, vector<16x128xf32>
    tpu.vector_store %arg15[%c1, %c0_5], %5 {strides = array<i32>} : memref<18x128xf32, #tpu.memory_space<vmem>>, vector<16x128xf32>,
    %c0_6 = arith.constant 0 : index
    %c0_7 = arith.constant 0 : index
    %7 = vector.load %arg3[%c0_6, %c0_7] : memref<1x128xf32, #tpu.memory_space<vmem>>, vector<1x128xf32>
    %c0_8 = arith.constant 0 : index
    %c0_9 = arith.constant 0 : index
    %8 = vector.load %arg4[%c0_8, %c0_9] : memref<1x128xf32, #tpu.memory_space<vmem>>, vector<1x128xf32>
    %c0_10 = arith.constant 0 : index
    %c0_11 = arith.constant 0 : index
    %9 = vector.load %arg15[%c0_10, %c0_11] : memref<18x128xf32, #tpu.memory_space<vmem>>, vector<16x128xf32>
    %c1_12 = arith.constant 1 : index
    %c0_13 = arith.constant 0 : index
    %10 = vector.load %arg15[%c1_12, %c0_13] : memref<18x128xf32, #tpu.memory_space<vmem>>, vector<16x128xf32>
    %c2 = arith.constant 2 : index
    %c0_14 = arith.constant 0 : index
    %11 = vector.load %arg15[%c2, %c0_14] : memref<18x128xf32, #tpu.memory_space<vmem>>, vector<16x128xf32>
    %12 = tpu.concatenate %9, %10, %11 in 1 : vector<16x128xf32>, vector<16x128xf32>, vector<16x128xf32> -> vector<16x384xf32>
    %13 = arith.truncf %12 : vector<16x384xf32> to vector<16x384xbf16>
    %c0_15 = arith.constant 0 : index
    %c0_16 = arith.constant 0 : index
    %14 = vector.load %arg2[%c0_15, %c0_16] : memref<384x128xbf16, #tpu.memory_space<vmem>>, vector<384x128xbf16>
    %cst_17 = arith.constant dense<0.000000e+00> : vector<16x128xf32>
    %15 = tpu.matmul %13, %14, %cst_17 {dimension_numbers = #tpu.dot_dimension_numbers<[1], [0], [0], [1], [0, 0, 1, 1], [], []>} : vector<16x384xbf16>, vector<384x128xbf16>, vector<16x128xf32> -> vector<16x128xf32>
    %16 = vector.broadcast %7 : vector<1x128xf32> to vector<16x128xf32>
    %17 = arith.mulf %15, %16 : vector<16x128xf32>
    %18 = vector.broadcast %8 : vector<1x128xf32> to vector<16x128xf32>
    %19 = arith.addf %17, %18 : vector<16x128xf32>
    %cst_18 = arith.constant 0.000000e+00 : f32
    %20 = vector.broadcast %cst_18 : f32 to vector<16x128xf32>
    %21 = arith.cmpf ogt, %19, %20 : vector<16x128xf32>
    %cst_19 = arith.constant 0.00999999977 : f32
    %22 = vector.broadcast %cst_19 : f32 to vector<16x128xf32>
    %23 = arith.mulf %22, %19 : vector<16x128xf32>
    %24 = arith.select %21, %19, %23 : vector<16x128xi1>, vector<16x128xf32>
    %25 = arith.addf %5, %24 : vector<16x128xf32>
    %c1_20 = arith.constant 1 : index
    %c0_21 = arith.constant 0 : index
    %26 = vector.load %arg15[%c1_20, %c0_21] : memref<18x128xf32, #tpu.memory_space<vmem>>, vector<16x128xf32>
    tpu.vector_store %arg15[%c1_20, %c0_21], %25 {strides = array<i32>} : memref<18x128xf32, #tpu.memory_space<vmem>>, vector<16x128xf32>,
    %c0_22 = arith.constant 0 : index
    %c0_23 = arith.constant 0 : index
    %27 = vector.load %arg6[%c0_22, %c0_23] : memref<1x128xf32, #tpu.memory_space<vmem>>, vector<1x128xf32>
    %c0_24 = arith.constant 0 : index
    %c0_25 = arith.constant 0 : index
    %28 = vector.load %arg7[%c0_24, %c0_25] : memref<1x128xf32, #tpu.memory_space<vmem>>, vector<1x128xf32>
    %c0_26 = arith.constant 0 : index
    %c0_27 = arith.constant 0 : index
    %29 = vector.load %arg15[%c0_26, %c0_27] : memref<18x128xf32, #tpu.memory_space<vmem>>, vector<16x128xf32>
    %c1_28 = arith.constant 1 : index
    %c0_29 = arith.constant 0 : index
    %30 = vector.load %arg15[%c1_28, %c0_29] : memref<18x128xf32, #tpu.memory_space<vmem>>, vector<16x128xf32>
    %c2_30 = arith.constant 2 : index
    %c0_31 = arith.constant 0 : index
    %31 = vector.load %arg15[%c2_30, %c0_31] : memref<18x128xf32, #tpu.memory_space<vmem>>, vector<16x128xf32>
    %32 = tpu.concatenate %29, %30, %31 in 1 : vector<16x128xf32>, vector<16x128xf32>, vector<16x128xf32> -> vector<16x384xf32>
    %33 = arith.truncf %32 : vector<16x384xf32> to vector<16x384xbf16>
    %c0_32 = arith.constant 0 : index
    %c0_33 = arith.constant 0 : index
    %34 = vector.load %arg5[%c0_32, %c0_33] : memref<384x128xbf16, #tpu.memory_space<vmem>>, vector<384x128xbf16>
    %cst_34 = arith.constant dense<0.000000e+00> : vector<16x128xf32>
    %35 = tpu.matmul %33, %34, %cst_34 {dimension_numbers = #tpu.dot_dimension_numbers<[1], [0], [0], [1], [0, 0, 1, 1], [], []>} : vector<16x384xbf16>, vector<384x128xbf16>, vector<16x128xf32> -> vector<16x128xf32>
    %36 = vector.broadcast %27 : vector<1x128xf32> to vector<16x128xf32>
    %37 = arith.mulf %35, %36 : vector<16x128xf32>
    %38 = vector.broadcast %28 : vector<1x128xf32> to vector<16x128xf32>
    %39 = arith.addf %37, %38 : vector<16x128xf32>
    %cst_35 = arith.constant 0.000000e+00 : f32
    %40 = vector.broadcast %cst_35 : f32 to vector<16x128xf32>
    %41 = arith.cmpf ogt, %39, %40 : vector<16x128xf32>
    %cst_36 = arith.constant 0.00999999977 : f32
    %42 = vector.broadcast %cst_36 : f32 to vector<16x128xf32>
    %43 = arith.mulf %42, %39 : vector<16x128xf32>
    %44 = arith.select %41, %39, %43 : vector<16x128xi1>, vector<16x128xf32>
    %c1_37 = arith.constant 1 : index
    %c0_38 = arith.constant 0 : index
    %45 = vector.load %arg15[%c1_37, %c0_38] : memref<18x128xf32, #tpu.memory_space<vmem>>, vector<16x128xf32>
    tpu.vector_store %arg15[%c1_37, %c0_38], %44 {strides = array<i32>} : memref<18x128xf32, #tpu.memory_space<vmem>>, vector<16x128xf32>,
    %c0_39 = arith.constant 0 : index
    %c0_40 = arith.constant 0 : index
    %46 = vector.load %arg9[%c0_39, %c0_40] : memref<1x128xf32, #tpu.memory_space<vmem>>, vector<1x128xf32>
    %c0_41 = arith.constant 0 : index
    %c0_42 = arith.constant 0 : index
    %47 = vector.load %arg10[%c0_41, %c0_42] : memref<1x128xf32, #tpu.memory_space<vmem>>, vector<1x128xf32>
    %c0_43 = arith.constant 0 : index
    %c0_44 = arith.constant 0 : index
    %48 = vector.load %arg15[%c0_43, %c0_44] : memref<18x128xf32, #tpu.memory_space<vmem>>, vector<16x128xf32>
    %c1_45 = arith.constant 1 : index
    %c0_46 = arith.constant 0 : index
    %49 = vector.load %arg15[%c1_45, %c0_46] : memref<18x128xf32, #tpu.memory_space<vmem>>, vector<16x128xf32>
    %c2_47 = arith.constant 2 : index
    %c0_48 = arith.constant 0 : index
    %50 = vector.load %arg15[%c2_47, %c0_48] : memref<18x128xf32, #tpu.memory_space<vmem>>, vector<16x128xf32>
    %51 = tpu.concatenate %48, %49, %50 in 1 : vector<16x128xf32>, vector<16x128xf32>, vector<16x128xf32> -> vector<16x384xf32>
    %52 = arith.truncf %51 : vector<16x384xf32> to vector<16x384xbf16>
    %c0_49 = arith.constant 0 : index
    %c0_50 = arith.constant 0 : index
    %53 = vector.load %arg8[%c0_49, %c0_50] : memref<384x128xbf16, #tpu.memory_space<vmem>>, vector<384x128xbf16>
    %cst_51 = arith.constant dense<0.000000e+00> : vector<16x128xf32>
    %54 = tpu.matmul %52, %53, %cst_51 {dimension_numbers = #tpu.dot_dimension_numbers<[1], [0], [0], [1], [0, 0, 1, 1], [], []>} : vector<16x384xbf16>, vector<384x128xbf16>, vector<16x128xf32> -> vector<16x128xf32>
    %55 = vector.broadcast %46 : vector<1x128xf32> to vector<16x128xf32>
    %56 = arith.mulf %54, %55 : vector<16x128xf32>
    %57 = vector.broadcast %47 : vector<1x128xf32> to vector<16x128xf32>
    %58 = arith.addf %56, %57 : vector<16x128xf32>
    %cst_52 = arith.constant 0.000000e+00 : f32
    %59 = vector.broadcast %cst_52 : f32 to vector<16x128xf32>
    %60 = arith.cmpf ogt, %58, %59 : vector<16x128xf32>
    %cst_53 = arith.constant 0.00999999977 : f32
    %61 = vector.broadcast %cst_53 : f32 to vector<16x128xf32>
    %62 = arith.mulf %61, %58 : vector<16x128xf32>
    %63 = arith.select %60, %58, %62 : vector<16x128xi1>, vector<16x128xf32>
    %64 = arith.addf %44, %63 : vector<16x128xf32>
    %c1_54 = arith.constant 1 : index
    %c0_55 = arith.constant 0 : index
    %65 = vector.load %arg15[%c1_54, %c0_55] : memref<18x128xf32, #tpu.memory_space<vmem>>, vector<16x128xf32>
    tpu.vector_store %arg15[%c1_54, %c0_55], %64 {strides = array<i32>} : memref<18x128xf32, #tpu.memory_space<vmem>>, vector<16x128xf32>,
    %c0_56 = arith.constant 0 : index
    %c0_57 = arith.constant 0 : index
    %66 = vector.load %arg12[%c0_56, %c0_57] : memref<1x128xf32, #tpu.memory_space<vmem>>, vector<1x128xf32>
    %c0_58 = arith.constant 0 : index
    %c0_59 = arith.constant 0 : index
    %67 = vector.load %arg13[%c0_58, %c0_59] : memref<1x128xf32, #tpu.memory_space<vmem>>, vector<1x128xf32>
    %c0_60 = arith.constant 0 : index
    %c0_61 = arith.constant 0 : index
    %68 = tpu.strided_load %arg15[%c0_60, %c0_61] {strides = array<i32: 2, 1>} : memref<18x128xf32, #tpu.memory_space<vmem>>, vector<8x128xf32>
    %c1_62 = arith.constant 1 : index
    %c0_63 = arith.constant 0 : index
    %69 = tpu.strided_load %arg15[%c1_62, %c0_63] {strides = array<i32: 2, 1>} : memref<18x128xf32, #tpu.memory_space<vmem>>, vector<8x128xf32>
    %c2_64 = arith.constant 2 : index
    %c0_65 = arith.constant 0 : index
    %70 = tpu.strided_load %arg15[%c2_64, %c0_65] {strides = array<i32: 2, 1>} : memref<18x128xf32, #tpu.memory_space<vmem>>, vector<8x128xf32>
    %71 = tpu.concatenate %68, %69, %70 in 1 : vector<8x128xf32>, vector<8x128xf32>, vector<8x128xf32> -> vector<8x384xf32>
    %72 = arith.truncf %71 : vector<8x384xf32> to vector<8x384xbf16>
    %c0_66 = arith.constant 0 : index
    %c0_67 = arith.constant 0 : index
    %73 = vector.load %arg11[%c0_66, %c0_67] : memref<384x128xbf16, #tpu.memory_space<vmem>>, vector<384x128xbf16>
    %cst_68 = arith.constant dense<0.000000e+00> : vector<8x128xf32>
    %74 = tpu.matmul %72, %73, %cst_68 {dimension_numbers = #tpu.dot_dimension_numbers<[1], [0], [0], [1], [0, 0, 1, 1], [], []>} : vector<8x384xbf16>, vector<384x128xbf16>, vector<8x128xf32> -> vector<8x128xf32>
    %75 = vector.broadcast %66 : vector<1x128xf32> to vector<8x128xf32>
    %76 = arith.mulf %74, %75 : vector<8x128xf32>
    %77 = vector.broadcast %67 : vector<1x128xf32> to vector<8x128xf32>
    %78 = arith.addf %76, %77 : vector<8x128xf32>
    %cst_69 = arith.constant 0.000000e+00 : f32
    %79 = vector.broadcast %cst_69 : f32 to vector<8x128xf32>
    %80 = arith.cmpf ogt, %78, %79 : vector<8x128xf32>
    %cst_70 = arith.constant 0.00999999977 : f32
    %81 = vector.broadcast %cst_70 : f32 to vector<8x128xf32>
    %82 = arith.mulf %81, %78 : vector<8x128xf32>
    %83 = arith.select %80, %78, %82 : vector<8x128xi1>, vector<8x128xf32>
    %c0_71 = arith.constant 0 : index
    %c0_72 = arith.constant 0 : index
    %c0_73 = arith.constant 0 : index
    %84 = vector.load %arg14[%c0_71, %c0_72, %c0_73] : memref<1x8x128xf32, #tpu.memory_space<vmem>>, vector<1x8x128xf32>
    %85 = vector.shape_cast %84 : vector<1x8x128xf32> to vector<8x128xf32>
    %86 = vector.shape_cast %83 : vector<8x128xf32> to vector<1x8x128xf32>
    tpu.vector_store %arg14[%c0_71, %c0_72, %c0_73], %86 {strides = array<i32>} : memref<1x8x128xf32, #tpu.memory_space<vmem>>, vector<1x8x128xf32>,
    return
  }
  func.func @transform_0(%arg0: i32) -> (i32, i32, i32) {
    %c0_i32 = arith.constant 0 : i32
    %c0_i32_0 = arith.constant 0 : i32
    %c0_i32_1 = arith.constant 0 : i32
    return %arg0, %c0_i32, %c0_i32_0 : i32, i32, i32
  }
  func.func @transform_1(%arg0: i32) -> (i32, i32) {
    %c0_i32 = arith.constant 0 : i32
    %c0_i32_0 = arith.constant 0 : i32
    %c0_i32_1 = arith.constant 0 : i32
    return %c0_i32, %c0_i32_0 : i32, i32
  }
  func.func @transform_2(%arg0: i32) -> (i32, i32) {
    %c0_i32 = arith.constant 0 : i32
    %c0_i32_0 = arith.constant 0 : i32
    %c0_i32_1 = arith.constant 0 : i32
    return %c0_i32, %c0_i32_0 : i32, i32
  }
  func.func @transform_3(%arg0: i32) -> (i32, i32) {
    %c0_i32 = arith.constant 0 : i32
    %c0_i32_0 = arith.constant 0 : i32
    %c0_i32_1 = arith.constant 0 : i32
    return %c0_i32, %c0_i32_0 : i32, i32
  }
  func.func @transform_4(%arg0: i32) -> (i32, i32) {
    %c0_i32 = arith.constant 0 : i32
    %c0_i32_0 = arith.constant 0 : i32
    %c0_i32_1 = arith.constant 0 : i32
    return %c0_i32, %c0_i32_0 : i32, i32
  }
  func.func @transform_5(%arg0: i32) -> (i32, i32) {
    %c0_i32 = arith.constant 0 : i32
    %c0_i32_0 = arith.constant 0 : i32
    %c0_i32_1 = arith.constant 0 : i32
    return %c0_i32, %c0_i32_0 : i32, i32
  }
  func.func @transform_6(%arg0: i32) -> (i32, i32) {
    %c0_i32 = arith.constant 0 : i32
    %c0_i32_0 = arith.constant 0 : i32
    %c0_i32_1 = arith.constant 0 : i32
    return %c0_i32, %c0_i32_0 : i32, i32
  }
  func.func @transform_7(%arg0: i32) -> (i32, i32) {
    %c0_i32 = arith.constant 0 : i32
    %c0_i32_0 = arith.constant 0 : i32
    %c0_i32_1 = arith.constant 0 : i32
    return %c0_i32, %c0_i32_0 : i32, i32
  }
  func.func @transform_8(%arg0: i32) -> (i32, i32) {
    %c0_i32 = arith.constant 0 : i32
    %c0_i32_0 = arith.constant 0 : i32
    %c0_i32_1 = arith.constant 0 : i32
    return %c0_i32, %c0_i32_0 : i32, i32
  }
  func.func @transform_9(%arg0: i32) -> (i32, i32) {
    %c0_i32 = arith.constant 0 : i32
    %c0_i32_0 = arith.constant 0 : i32
    %c0_i32_1 = arith.constant 0 : i32
    return %c0_i32, %c0_i32_0 : i32, i32
  }
  func.func @transform_10(%arg0: i32) -> (i32, i32) {
    %c0_i32 = arith.constant 0 : i32
    %c0_i32_0 = arith.constant 0 : i32
    %c0_i32_1 = arith.constant 0 : i32
    return %c0_i32, %c0_i32_0 : i32, i32
  }
  func.func @transform_11(%arg0: i32) -> (i32, i32) {
    %c0_i32 = arith.constant 0 : i32
    %c0_i32_0 = arith.constant 0 : i32
    %c0_i32_1 = arith.constant 0 : i32
    return %c0_i32, %c0_i32_0 : i32, i32
  }
  func.func @transform_12(%arg0: i32) -> (i32, i32) {
    %c0_i32 = arith.constant 0 : i32
    %c0_i32_0 = arith.constant 0 : i32
    %c0_i32_1 = arith.constant 0 : i32
    return %c0_i32, %c0_i32_0 : i32, i32
  }
  func.func @transform_13(%arg0: i32) -> (i32, i32, i32) {
    %c0_i32 = arith.constant 0 : i32
    %c0_i32_0 = arith.constant 0 : i32
    %c0_i32_1 = arith.constant 0 : i32
    return %arg0, %c0_i32, %c0_i32_0 : i32, i32, i32
  }
}

</mosaic_0001>

<bundles_post_ra>
// kernel: tpu_custom_call.1
= control target key start
LH: loop header
LB: loop body
LE: loop exit
PB: predicated region body
PF: predicated region fallthrough
CT: control target
= control target key end

     0   :  { %18 = vsyncpa [#allocation4], 0  ;;  %s2198_s0 = inlined_call_operand.hbm [shape: bf16[1,16,128], index: 0, kind: input, shape index: {}]   ;;  %s2199_s1 = inlined_call_operand.hbm [shape: bf16[384,128], index: 1, kind: input, shape index: {}]   ;;  %s2200_s2 = inlined_call_operand.vmem [shape: f32[1,128], index: 2, kind: input, shape index: {}]   ;;  %s2201_s3 = inlined_call_operand.vmem [shape: f32[1,128], index: 3, kind: input, shape index: {}]   ;;  %s2202_s4 = inlined_call_operand.hbm [shape: bf16[384,128], index: 4, kind: input, shape index: {}]   ;;  %s2203_s5 = inlined_call_operand.vmem [shape: f32[1,128], index: 5, kind: input, shape index: {}]   ;;  %s2204_s6 = inlined_call_operand.vmem [shape: f32[1,128], index: 6, kind: input, shape index: {}]   ;;  %s2205_s7 = inlined_call_operand.hbm [shape: bf16[384,128], index: 7, kind: input, shape index: {}]   ;;  %s2206_s8 = inlined_call_operand.vmem [shape: f32[1,128], index: 8, kind: input, shape index: {}]   ;;  %s2207_s9 = inlined_call_operand.vmem [shape: f32[1,128], index: 9, kind: input, shape index: {}]   ;;  %s2208_s10 = inlined_call_operand.hbm [shape: bf16[384,128], index: 10, kind: input, shape index: {}]   ;;  %s2209_s11 = inlined_call_operand.vmem [shape: f32[1,128], index: 11, kind: input, shape index: {}]   ;;  %s2210_s12 = inlined_call_operand.vmem [shape: f32[1,128], index: 12, kind: input, shape index: {}]   ;;  %s2211_s13 = inlined_call_operand.hbm [shape: f32[1,8,128], index: 13, kind: output, shape index: {}]  }
   0x1   :  { %19 = vsyncpa [#allocation7], 0 }
   0x2   :  { %20 = vsyncpa [#allocation10], 0 }
   0x3   :  { %21 = vsyncpa [#allocation5], 0  ;;  %s1929_s25 = smov [#allocation6]   ;;  %s1930_s27 = smov [#allocation9]  }
   0x4   :  { %s39_s26 = sshll.u32 %s1929_s25, 4  ;;  %s71_s28 = sshll.u32 %s1930_s27, 4  ;;  %s40_s26 = int_to_ptr.vmem [resolvable:$true] %s39_s26  ;;  %s2009_s28 = int_to_ptr.vmem [resolvable:$true] %s71_s28 }
   0x5   :  { %s1789_s14 = scalar_lea.hbm %s2199_s1, 3072 }
   0x6   :  { %p1790_p0 = scmp.ne.s32.totalorder %s2199_s1, %s1789_s14  ;;  %p1793_p1 = scmp.lt.u32.totalorder %s1789_s14, %s2199_s1 }
   0x8   :  { %p1795_p2 = pnand %p1793_p1, %p1790_p0 }
   0xa   :  { %1798 = shalt.err (!%p1795_p2)
}
   0xb   :  { %s1799_s19 = scalar_lea.vmem %s40_s26, 3072  ;;  %p1804_p4 = scmp.lt.s32.totalorder %s40_s26, %s40_s26 }
   0xc   :  { %p1800_p3 = scmp.ne.s32.totalorder %s40_s26, %s1799_s19  ;;  %p1805_p5 = scmp.lt.s32.totalorder %s1799_s19, %s1799_s19 }
   0xe   :  { %p1806_p6 = por %p1805_p5, %p1804_p4 }
  0x10   :  { %p1807_p7 = pnand %p1806_p6, %p1800_p3 }
  0x12   :  { %1810 = shalt.err (!%p1807_p7)
}
  0x13   :  { %s1931_s20 = smov 64   ;;  %s1932_s21 = smov 4  }
  0x14   :  { %45 = dma.hbm_to_vmem [thread:$0]  %s2199_s1, 3072, %s40_s26, [#allocation7], %s1931_s20, %s1931_s20, %s1932_s21  }
  0x15   :  { %s1811_s27 = scalar_lea.hbm %s2205_s7, 3072 }
  0x16   :  { %p1812_p8 = scmp.ne.s32.totalorder %s2205_s7, %s1811_s27  ;;  %p1815_p9 = scmp.lt.u32.totalorder %s1811_s27, %s2205_s7 }
  0x18   :  { %p1817_p10 = pnand %p1815_p9, %p1812_p8 }
  0x1a   :  { %1820 = shalt.err (!%p1817_p10)
}
  0x1b   :  { %s1821_s16 = scalar_lea.vmem %s2009_s28, 3072  ;;  %p1826_p12 = scmp.lt.s32.totalorder %s2009_s28, %s2009_s28 }
  0x1c   :  { %p1822_p11 = scmp.ne.s32.totalorder %s2009_s28, %s1821_s16  ;;  %p1827_p13 = scmp.lt.s32.totalorder %s1821_s16, %s1821_s16 }
  0x1e   :  { %p1828_p0 = por %p1827_p13, %p1826_p12 }
  0x20   :  { %p1829_p1 = pnand %p1828_p0, %p1822_p11 }
  0x22   :  { %1832 = shalt.err (!%p1829_p1)
}
  0x23   :  { %77 = dma.hbm_to_vmem [thread:$0]  %s2205_s7, 3072, %s2009_s28, [#allocation10], %s1931_s20, %s1931_s20, %s1932_s21  }
  0x24   :  { %s1933_s17 = smov [#allocation3]   ;;  %s1934_s19 = smov [#allocation8]  }
  0x25   :  { %s27_s18 = sshll.u32 %s1933_s17, 4  ;;  %s55_s22 = sshll.u32 %s1934_s19, 4  ;;  %s28_s18 = int_to_ptr.vmem [resolvable:$true] %s27_s18  ;;  %s2046_s22 = int_to_ptr.vmem [resolvable:$true] %s55_s22 }
  0x26   :  { %s1833_s25 = scalar_lea.hbm %s2198_s0, 128 }
  0x27   :  { %p1834_p2 = scmp.ne.s32.totalorder %s2198_s0, %s1833_s25  ;;  %p1837_p3 = scmp.lt.u32.totalorder %s1833_s25, %s2198_s0 }
  0x29   :  { %p1839_p4 = pnand %p1837_p3, %p1834_p2 }
  0x2b   :  { %1842 = shalt.err (!%p1839_p4)
}
  0x2c   :  { %s1843_s7 = scalar_lea.vmem %s28_s18, 128  ;;  %p1848_p6 = scmp.lt.s32.totalorder %s28_s18, %s28_s18 }
  0x2d   :  { %p1844_p5 = scmp.ne.s32.totalorder %s28_s18, %s1843_s7  ;;  %p1849_p7 = scmp.lt.s32.totalorder %s1843_s7, %s1843_s7 }
  0x2f   :  { %p1850_p8 = por %p1849_p7, %p1848_p6 }
  0x31   :  { %p1851_p9 = pnand %p1850_p8, %p1844_p5 }
  0x33   :  { %1854 = shalt.err (!%p1851_p9)
}
  0x34   :  { %33 = dma.hbm_to_vmem [thread:$0]  %s2198_s0, 128, %s28_s18, [#allocation4], %s1931_s20, %s1931_s20, %s1932_s21  }
  0x35   :  { %s1855_s26 = scalar_lea.hbm %s2202_s4, 3072 }
  0x36   :  { %p1856_p10 = scmp.ne.s32.totalorder %s2202_s4, %s1855_s26  ;;  %p1859_p11 = scmp.lt.u32.totalorder %s1855_s26, %s2202_s4 }
  0x38   :  { %p1861_p12 = pnand %p1859_p11, %p1856_p10 }
  0x3a   :  { %1864 = shalt.err (!%p1861_p12)
}
  0x3b   :  { %s1865_s25 = scalar_lea.vmem %s2046_s22, 3072  ;;  %p1870_p0 = scmp.lt.s32.totalorder %s2046_s22, %s2046_s22 }
  0x3c   :  { %p1866_p13 = scmp.ne.s32.totalorder %s2046_s22, %s1865_s25  ;;  %p1871_p1 = scmp.lt.s32.totalorder %s1865_s25, %s1865_s25 }
  0x3e   :  { %p1872_p2 = por %p1871_p1, %p1870_p0 }
  0x40   :  { %p1873_p3 = pnand %p1872_p2, %p1866_p13 }
  0x42   :  { %1876 = shalt.err (!%p1873_p3)
}
  0x43   :  { %61 = dma.hbm_to_vmem [thread:$0]  %s2202_s4, 3072, %s2046_s22, [#allocation7], %s1931_s20, %s1931_s20, %s1932_s21  }
  0x44   :  { %s1935_s27 = smov [#allocation11]   ;;  %s1877_s7 = scalar_lea.hbm %s2208_s10, 3072 }
  0x45   :  { %s87_s29 = sshll.u32 %s1935_s27, 4  ;;  %p1878_p4 = scmp.ne.s32.totalorder %s2208_s10, %s1877_s7  ;;  %s88_s29 = int_to_ptr.vmem [resolvable:$true] %s87_s29 }
  0x46   :  { %p1881_p5 = scmp.lt.u32.totalorder %s1877_s7, %s2208_s10 }
  0x48   :  { %p1883_p6 = pnand %p1881_p5, %p1878_p4 }
  0x4a   :  { %1886 = shalt.err (!%p1883_p6)
}
  0x4b   :  { %s1887_s26 = scalar_lea.vmem %s88_s29, 3072  ;;  %p1892_p8 = scmp.lt.s32.totalorder %s88_s29, %s88_s29 }
  0x4c   :  { %p1888_p7 = scmp.ne.s32.totalorder %s88_s29, %s1887_s26  ;;  %p1893_p9 = scmp.lt.s32.totalorder %s1887_s26, %s1887_s26 }
  0x4e   :  { %p1894_p10 = por %p1893_p9, %p1892_p8 }
  0x50   :  { %p1895_p11 = pnand %p1894_p10, %p1888_p7 }
  0x52   :  { %1898 = shalt.err (!%p1895_p11)
}
  0x53   :  { %93 = dma.hbm_to_vmem [thread:$0]  %s2208_s10, 3072, %s88_s29, [#allocation10], %s1931_s20, %s1931_s20, %s1932_s21  }
  0x54   :  { %1921 = dma.done.wait [#allocation4], 128  }
  0x55   :  { %1922 = vsyncadd [#allocation4], 4294967168 }
  0x56   :  { %1923 = dma.done.wait [#allocation7], 6144  }
  0x57   :  { %1924 = vsyncadd [#allocation7], 4294961152 }
  0x58   :  { %1925 = dma.done.wait [#allocation10], 6144  }
  0x59   :  { %1926 = vsyncadd [#allocation10], 4294961152  ;;  %v1936_v0 = vmov 0.0   ;;  %vm1937_vm0 = vmmov 0   ;;  %v1692_v1 = vld [vmem:[#allocation6 + $0x40] sm:$0xff]   ;;  %v1695_v4 = vld [vmem:[#allocation6 + $0x48] sm:$0xff]  }
  0x5a   :  { %1602 = vmatprep.subr.bf16.mxu1 %v1936_v0  ;;  %114 = vst [vmem:[#allocation2] sm:$0x1] %v1936_v0  ;;  %115 = vst [vmem:[#allocation2 + $0x11] sm:$0x1] %v1936_v0  ;;  %1618 = vmatprep.mubr.msk.bf16.mxu1 %vm1937_vm0, %v1936_v0  ;;  %v1693_v2 = vld [vmem:[#allocation6] sm:$0xff]   ;;  %v1696_v5 = vld [vmem:[#allocation6 + $0x8] sm:$0xff]  }
  0x5b   :  { %1478 = vmatprep.subr.bf16.mxu0 %v1692_v1  ;;  %v1694_v3 = vld [vmem:[#allocation6 + $0x80] sm:$0xff]   ;;  %v1697_v6 = vld [vmem:[#allocation6 + $0x88] sm:$0xff]   ;;  %v1698_v7 = vld [vmem:[#allocation6 + $0x50] sm:$0xff]   ;;  %s1938_s27 = smov [#allocation12]  }
  0x5c   :  { %1479 = vmatpush3.bf16.msra.mxu0 %v1693_v2  ;;  %1603 = vmatpush3.bf16.msra.mxu1 %v1694_v3  ;;  %v1699_v8 = vld [vmem:[#allocation6 + $0x10] sm:$0xff]   ;;  %v1701_v10 = vld [vmem:[#allocation6 + $0x58] sm:$0xff]   ;;  %v1704_v13 = vld [vmem:[#allocation6 + $0x60] sm:$0xff]   ;;  %s1359_s29 = sshll.u32 %s1938_s27, 4  ;;  %s1360_s29 = int_to_ptr.vmem [resolvable:$true] %s1359_s29 }
  0x5d   :  { %1480 = vmatprep.subr.bf16.mxu0 %v1695_v4  ;;  %1604 = vmatprep.subr.bf16.mxu1 %v1936_v0  ;;  %v1700_v9 = vld [vmem:[#allocation6 + $0x90] sm:$0xff]   ;;  %v1702_v11 = vld [vmem:[#allocation6 + $0x18] sm:$0xff]   ;;  %v1705_v14 = vld [vmem:[#allocation6 + $0x20] sm:$0xff]   ;;  %s1899_s30 = scalar_lea.vmem %s1360_s29, 128  ;;  %p1904_p13 = scmp.lt.s32.totalorder %s1360_s29, %s1360_s29 }
  0x5e   :  { %v1703_v12 = vld [vmem:[#allocation6 + $0x98] sm:$0xff]   ;;  %v1706_v15 = vld [vmem:[#allocation6 + $0xa0] sm:$0xff]   ;;  %v1707_v16 = vld [vmem:[#allocation6 + $0x68] sm:$0xff]   ;;  %p1900_p12 = scmp.ne.s32.totalorder %s1360_s29, %s1899_s30  ;;  %p1905_p0 = scmp.lt.s32.totalorder %s1899_s30, %s1899_s30 }
  0x5f   :  { %v1708_v17 = vld [vmem:[#allocation6 + $0x28] sm:$0xff]   ;;  %v1710_v19 = vld [vmem:[#allocation6 + $0x70] sm:$0xff]   ;;  %v1713_v22 = vld [vmem:[#allocation6 + $0x78] sm:$0xff]  }
  0x60   :  { %1481 = vmatpush3.bf16.msra.mxu0 %v1696_v5  ;;  %1605 = vmatpush3.bf16.msra.mxu1 %v1697_v6  ;;  %v1709_v18 = vld [vmem:[#allocation6 + $0xa8] sm:$0xff]   ;;  %v1711_v20 = vld [vmem:[#allocation6 + $0x30] sm:$0xff]   ;;  %v2108_v23 = vld [vmem:[#allocation3] sm:$0xff]   ;;  %p1906_p1 = por %p1905_p0, %p1904_p13 }
  0x61   :  { %1482 = vmatprep.subr.bf16.mxu0 %v1698_v7  ;;  %1606 = vmatprep.subr.bf16.mxu1 %v1936_v0  ;;  %v1712_v21 = vld [vmem:[#allocation6 + $0xb0] sm:$0xff]   ;;  %v1716_v24 = vld [vmem:[#allocation3] sm:$0xff]  ;;  %v1476_v26 = vunpack.c.l.bf16 %v2108_v23  ;;  %v1477_v27 = vunpack.c.h.bf16 %v2108_v23  ;;  %v1717_v29 = vld [vmem:[#allocation8 + $0x40] sm:$0xff]  }
  0x62   :  { %v1714_v25 = vld [vmem:[#allocation6 + $0x38] sm:$0xff]   ;;  %357 = vmatprep.mubr.bf16.mxu0 %v1716_v24  ;;  %v1719_v30 = vld [vmem:[#allocation8] sm:$0xff]   ;;  %v1720_v38 = vld [vmem:[#allocation8 + $0x48] sm:$0xff]   ;;  %p1907_p2 = pnand %p1906_p1, %p1900_p12 }
  0x63   :  { %v1715_v28 = vld [vmem:[#allocation6 + $0xb8] sm:$0xff]   ;;  %120 = vst [vmem:[#allocation2 + $0x1] sm:$0xff] %v1476_v26  ;;  %121 = vst [vmem:[#allocation2 + $0x9] sm:$0xff] %v1477_v27  ;;  %v1718_v31 = vld [vmem:[#allocation8 + $0x80] sm:$0xff]  }
  0x64   :  { %1483 = vmatpush3.bf16.msra.mxu0 %v1699_v8  ;;  %1607 = vmatpush3.bf16.msra.mxu1 %v1700_v9  ;;  %v1721_v39 = vld [vmem:[#allocation8 + $0x88] sm:$0xff]   ;;  %v1723_v41 = vld [vmem:[#allocation8 + $0x50] sm:$0xff]   ;;  %v1726_v44 = vld [vmem:[#allocation8 + $0x58] sm:$0xff]  }
  0x65   :  { %1484 = vmatprep.subr.bf16.mxu0 %v1701_v10  ;;  %1608 = vmatprep.subr.bf16.mxu1 %v1936_v0  ;;  %v1722_v40 = vld [vmem:[#allocation8 + $0x8] sm:$0xff]   ;;  %v1724_v42 = vld [vmem:[#allocation8 + $0x90] sm:$0xff]   ;;  %v1727_v45 = vld [vmem:[#allocation8 + $0x98] sm:$0xff]  }
  0x66   :  { %v1725_v43 = vld [vmem:[#allocation8 + $0x10] sm:$0xff]   ;;  %v1728_v46 = vld [vmem:[#allocation8 + $0x18] sm:$0xff]   ;;  %v1729_v47 = vld [vmem:[#allocation8 + $0x60] sm:$0xff]  }
  0x67   :  { %v1730_v48 = vld [vmem:[#allocation8 + $0xa0] sm:$0xff]   ;;  %v1732_v50 = vld [vmem:[#allocation8 + $0x68] sm:$0xff]   ;;  %v1735_v53 = vld [vmem:[#allocation8 + $0x70] sm:$0xff]  }
  0x68   :  { %1485 = vmatpush3.bf16.msra.mxu0 %v1702_v11  ;;  %1609 = vmatpush3.bf16.msra.mxu1 %v1703_v12  ;;  %v1731_v49 = vld [vmem:[#allocation8 + $0x20] sm:$0xff]   ;;  %v1733_v51 = vld [vmem:[#allocation8 + $0xa8] sm:$0xff]   ;;  %v1736_v54 = vld [vmem:[#allocation8 + $0xb0] sm:$0xff]  }
  0x69   :  { %1486 = vmatprep.subr.bf16.mxu0 %v1704_v13  ;;  %1610 = vmatprep.subr.bf16.mxu1 %v1936_v0  ;;  %v1734_v52 = vld [vmem:[#allocation8 + $0x28] sm:$0xff]   ;;  %v1737_v55 = vld [vmem:[#allocation8 + $0x30] sm:$0xff]   ;;  %v1738_v56 = vld [vmem:[#allocation8 + $0x78] sm:$0xff]  }
  0x6a   :  { %v124_v32 = vld [vmem:[#allocation2] sm:$0xff]  ;;  %v125_v33 = vld [vmem:[#allocation2 + $0x8] sm:$0xff]  ;;  %v1739_v57 = vld [vmem:[#allocation8 + $0xb8] sm:$0xff]  }
  0x6b   :  { %v128_v34 = vld [vmem:[#allocation2 + $0x2] sm:$0xff]  ;;  %v130_v35 = vpack.c.bf16 %v125_v33, %v124_v32  ;;  %v129_v36 = vld [vmem:[#allocation2 + $0xa] sm:$0xff]  ;;  %v1740_v58 = vld [vmem:[#allocation8 + $0x38] sm:$0xff]  }
  0x6c   :  { %1487 = vmatpush3.bf16.msra.mxu0 %v1705_v14  ;;  %1611 = vmatpush3.bf16.msra.mxu1 %v1706_v15  ;;  %v132_v37 = vpack.c.bf16 %v129_v36, %v128_v34  ;;  %v1741_v59 = vld [vmem:[#allocation9 + $0x40] sm:$0xff]   ;;  %v1744_v33 = vld [vmem:[#allocation9 + $0x48] sm:$0xff]   ;;  %v1748_v34 = vld [vmem:[#allocation9 + $0x90] sm:$0xff]  }
  0x6d   :  { %1488 = vmatprep.subr.bf16.mxu0 %v1707_v16  ;;  %1612 = vmatprep.subr.bf16.mxu1 %v1936_v0  ;;  %v1394_v3 = vld [vmem:[%s2200_s2] ss:$0 sm:$0xff]  ;;  %v1746_v23 = vld [vmem:[#allocation9 + $0x8] sm:$0xff]   ;;  %v1750_v36 = vld [vmem:[#allocation9 + $0x58] sm:$0xff]  }
  0x6e   :  { %v1395_v9 = vld [vmem:[%s2201_s3] ss:$0 sm:$0xff] }
  0x6f   :  { %v1742_v24 = vld [vmem:[#allocation9 + $0x80] sm:$0xff]  }
  0x70   :  { %1489 = vmatpush3.bf16.msra.mxu0 %v1708_v17  ;;  %1613 = vmatpush3.bf16.msra.mxu1 %v1709_v18 }
  0x71   :  { %1490 = vmatprep.subr.bf16.mxu0 %v1710_v19  ;;  %1614 = vmatprep.subr.bf16.mxu1 %v1936_v0 }
  0x74   :  { %1491 = vmatpush3.bf16.msra.mxu0 %v1711_v20  ;;  %1615 = vmatpush3.bf16.msra.mxu1 %v1712_v21 }
  0x75   :  { %1492 = vmatprep.subr.bf16.mxu0 %v1713_v22  ;;  %1616 = vmatprep.subr.bf16.mxu1 %v1936_v0 }
  0x78   :  { %1493 = vmatpush3.bf16.msra.mxu0 %v1714_v25  ;;  %1617 = vmatpush3.bf16.msra.mxu1 %v1715_v28  ;;  %v1743_v25 = vld [vmem:[#allocation9] sm:$0xff]  }
  0x79   :  { %1509 = vmatprep.subr.bf16.mxu0 %v1717_v29  ;;  %1622 = vmatprep.subr.bf16.mxu1 %v1936_v0 }
  0x7b   :  { %358 = vmatmul.mubr.bf16.vlgmr.msra.gmra.mrb[0].mxu0 %v130_v35  ;;  %1619 = vmatmul.mubr.bf16.vlgmr.msra.gmra.mrb[0].mxu1 %v132_v37  ;;  %v1749_v35 = vld [vmem:[#allocation9 + $0x10] sm:$0xff]   ;;  %v1751_v37 = vld [vmem:[#allocation9 + $0x98] sm:$0xff]  }
  0x7c   :  { %1510 = vmatpush3.bf16.msra.mxu0 %v1719_v30  ;;  %1623 = vmatpush3.bf16.msra.mxu1 %v1718_v31 }
  0x7d   :  { %1638 = vmatprep.mubr.msk.bf16.mxu1 %vm1937_vm0, %v1936_v0  ;;  %1624 = vmatprep.subr.bf16.mxu1 %v1936_v0 }
  0x7e   :  { %1511 = vmatprep.subr.bf16.mxu0 %v1720_v38  ;;  %v1752_v38 = vld [vmem:[#allocation9 + $0x18] sm:$0xff]  }
  0x80   :  { %1625 = vmatpush3.bf16.msra.mxu1 %v1721_v39  ;;  %1512 = vmatpush3.bf16.msra.mxu0 %v1722_v40  ;;  %v1753_v39 = vld [vmem:[#allocation9 + $0x60] sm:$0xff]  }
  0x81   :  { %1626 = vmatprep.subr.bf16.mxu1 %v1936_v0  ;;  %1513 = vmatprep.subr.bf16.mxu0 %v1723_v41  ;;  %v1754_v40 = vld [vmem:[#allocation9 + $0xa0] sm:$0xff]  }
  0x82   :  { %v1755_v41 = vld [vmem:[#allocation9 + $0x20] sm:$0xff]  }
  0x84   :  { %1627 = vmatpush3.bf16.msra.mxu1 %v1724_v42  ;;  %1514 = vmatpush3.bf16.msra.mxu0 %v1725_v43  ;;  %v1756_v42 = vld [vmem:[#allocation9 + $0x68] sm:$0xff]  }
  0x85   :  { %1628 = vmatprep.subr.bf16.mxu1 %v1936_v0  ;;  %1515 = vmatprep.subr.bf16.mxu0 %v1726_v44  ;;  %v1757_v43 = vld [vmem:[#allocation9 + $0xa8] sm:$0xff]  }
  0x86   :  { %v1758_v44 = vld [vmem:[#allocation9 + $0x28] sm:$0xff]  }
  0x88   :  { %1629 = vmatpush3.bf16.msra.mxu1 %v1727_v45  ;;  %1516 = vmatpush3.bf16.msra.mxu0 %v1728_v46  ;;  %v1759_v45 = vld [vmem:[#allocation9 + $0x70] sm:$0xff]  }
  0x89   :  { %1630 = vmatprep.subr.bf16.mxu1 %v1936_v0  ;;  %1517 = vmatprep.subr.bf16.mxu0 %v1729_v47  ;;  %v1760_v46 = vld [vmem:[#allocation9 + $0xb0] sm:$0xff]  }
  0x8a   :  { %v1761_v47 = vld [vmem:[#allocation9 + $0x30] sm:$0xff]  }
  0x8c   :  { %1631 = vmatpush3.bf16.msra.mxu1 %v1730_v48  ;;  %1518 = vmatpush3.bf16.msra.mxu0 %v1731_v49  ;;  %v1762_v48 = vld [vmem:[#allocation9 + $0x78] sm:$0xff]  }
  0x8d   :  { %1632 = vmatprep.subr.bf16.mxu1 %v1936_v0  ;;  %1519 = vmatprep.subr.bf16.mxu0 %v1732_v50  ;;  %v1763_v49 = vld [vmem:[#allocation9 + $0xb8] sm:$0xff]  }
  0x8e   :  { %v1764_v50 = vld [vmem:[#allocation9 + $0x38] sm:$0xff]  }
  0x90   :  { %1633 = vmatpush3.bf16.msra.mxu1 %v1733_v51  ;;  %1520 = vmatpush3.bf16.msra.mxu0 %v1734_v52  ;;  %v1765_v51 = vld [vmem:[#allocation11 + $0x40] sm:$0xff]  }
  0x91   :  { %1634 = vmatprep.subr.bf16.mxu1 %v1936_v0  ;;  %1521 = vmatprep.subr.bf16.mxu0 %v1735_v53 }
  0x94   :  { %1635 = vmatpush3.bf16.msra.mxu1 %v1736_v54  ;;  %1522 = vmatpush3.bf16.msra.mxu0 %v1737_v55 }
  0x95   :  { %1636 = vmatprep.subr.bf16.mxu1 %v1936_v0  ;;  %1523 = vmatprep.subr.bf16.mxu0 %v1738_v56 }
  0x98   :  { %1637 = vmatpush3.bf16.msra.mxu1 %v1739_v57  ;;  %1524 = vmatpush3.bf16.msra.mxu0 %v1740_v58 }
  0x99   :  { %1642 = vmatprep.subr.bf16.mxu1 %v1936_v0  ;;  %1540 = vmatprep.subr.bf16.mxu0 %v1741_v59  ;;  %v1420_v59 = vld [vmem:[%s2203_s5] ss:$0 sm:$0xff] }
 0x14e   :  { %v1494_v60 = vpop.f32.mrb[0].mxu0  ;;  %v400_v61 = vpop.f32.mrb[0].mxu1 }
 0x14f   :  { %v1495_v62 = vpop.f32.mrb[1].mxu0  ;;  %v1620_v1 = vpop.f32.mrb[1].mxu1 }
 0x150   :  { %v1496_v63 = vadd.f32 %v1495_v62, %v1494_v60  ;;  %v1497_v2 = vpop.f32.mrb[2].mxu0  ;;  %v403_v4 = vpop.f32.mrb[2].mxu1  ;;  %v1421_v1 = vld [vmem:[%s2204_s6] ss:$0 sm:$0xff] }
 0x151   :  { %v1498_v5 = vpop.f32.mrb[3].mxu0  ;;  %v1621_v8 = vpop.f32.mrb[3].mxu1 }
 0x152   :  { %v401_v6 = vadd.f32 %v1496_v63, %v400_v61  ;;  %v1499_v7 = vadd.f32 %v1498_v5, %v1497_v2 }
 0x154   :  { %v413_v10 = vmul.f32 %v1394_v3, %v401_v6  ;;  %v404_v11 = vadd.f32 %v1499_v7, %v403_v4 }
 0x156   :  { %v421_v12 = vadd.f32 %v1395_v9, %v413_v10  ;;  %v414_v13 = vmul.f32 %v1394_v3, %v404_v11 }
 0x158   :  { %vm423_vm1 = vcmp.gt.f32.partialorder %v421_v12, 0.0  ;;  %v425_v14 = vmul.f32 0.01, %v421_v12  ;;  %v422_v15 = vadd.f32 %v1395_v9, %v414_v13  ;;  %v1766_v13 = vld [vmem:[#allocation11 + $0x80] sm:$0xff]  }
 0x15a   :  { %v427_v16 = vsel %vm423_vm1, %v421_v12, %v425_v14  ;;  %vm424_vm2 = vcmp.gt.f32.partialorder %v422_v15, 0.0  ;;  %v426_v17 = vmul.f32 0.01, %v422_v15  ;;  %v1767_v14 = vld [vmem:[#allocation11] sm:$0xff]  }
 0x15b   :  { %v429_v18 = vadd.f32 %v1476_v26, %v427_v16  ;;  %v1745_v26 = vld [vmem:[#allocation9 + $0x88] sm:$0xff]  }
 0x15c   :  { %v428_v19 = vsel %vm424_vm2, %v422_v15, %v426_v17 }
 0x15d   :  { %431 = vst [vmem:[#allocation2 + $0x1] sm:$0xff] %v429_v18  ;;  %v430_v20 = vadd.f32 %v1477_v27, %v428_v19  ;;  %v1747_v27 = vld [vmem:[#allocation9 + $0x50] sm:$0xff]  }
 0x15f   :  { %432 = vst [vmem:[#allocation2 + $0x9] sm:$0xff] %v430_v20  ;;  %v442_v21 = vpack.c.bf16 %v430_v20, %v429_v18  ;;  %v1768_v20 = vld [vmem:[#allocation11 + $0x48] sm:$0xff]  }
 0x161   :  { %668 = vmatprep.mubr.bf16.mxu0 %v442_v21  ;;  %v1769_v21 = vld [vmem:[#allocation11 + $0x88] sm:$0xff]  }
 0x164   :  { %v435_v22 = vld [vmem:[#allocation2] sm:$0xff] }
 0x166   :  { %v439_v28 = vld [vmem:[#allocation2 + $0x2] sm:$0xff]  ;;  %v440_v29 = vld [vmem:[#allocation2 + $0xa] sm:$0xff] }
 0x167   :  { %v436_v30 = vld [vmem:[#allocation2 + $0x8] sm:$0xff]  ;;  %v443_v31 = vpack.c.bf16 %v440_v29, %v439_v28  ;;  %v1773_v28 = vld [vmem:[#allocation11 + $0x10] sm:$0xff]   ;;  %v1774_v29 = vld [vmem:[#allocation11 + $0x58] sm:$0xff]  }
 0x168   :  { %v441_v32 = vpack.c.bf16 %v436_v30, %v435_v22  ;;  %v1770_v22 = vld [vmem:[#allocation11 + $0x8] sm:$0xff]   ;;  %v1775_v30 = vld [vmem:[#allocation11 + $0x98] sm:$0xff]  }
 0x169   :  { %1639 = vmatmul.mubr.bf16.vlgmr.msra.gmra.mrb[4].mxu1 %v443_v31  ;;  %v1776_v31 = vld [vmem:[#allocation11 + $0x18] sm:$0xff]  }
 0x16a   :  { %669 = vmatmul.mubr.bf16.vlgmr.msra.gmra.mrb[4].mxu0 %v441_v32  ;;  %1643 = vmatpush3.bf16.msra.mxu1 %v1742_v24  ;;  %v1771_v24 = vld [vmem:[#allocation11 + $0x50] sm:$0xff]   ;;  %v1777_v32 = vld [vmem:[#allocation11 + $0x60] sm:$0xff]  }
 0x16b   :  { %1541 = vmatpush3.bf16.msra.mxu0 %v1743_v25  ;;  %1644 = vmatprep.subr.bf16.mxu1 %v1936_v0  ;;  %v1772_v25 = vld [vmem:[#allocation11 + $0x90] sm:$0xff]  }
 0x16c   :  { %1542 = vmatprep.subr.bf16.mxu0 %v1744_v33  ;;  %1658 = vmatprep.mubr.msk.bf16.mxu1 %vm1937_vm0, %v1936_v0  ;;  %v1778_v33 = vld [vmem:[#allocation11 + $0xa0] sm:$0xff]  }
 0x16e   :  { %1645 = vmatpush3.bf16.msra.mxu1 %v1745_v26  ;;  %v1779_v26 = vld [vmem:[#allocation11 + $0x20] sm:$0xff]  }
 0x16f   :  { %1646 = vmatprep.subr.bf16.mxu1 %v1936_v0  ;;  %1543 = vmatpush3.bf16.msra.mxu0 %v1746_v23  ;;  %v1780_v23 = vld [vmem:[#allocation11 + $0x68] sm:$0xff]  }
 0x170   :  { %1544 = vmatprep.subr.bf16.mxu0 %v1747_v27  ;;  %v1781_v27 = vld [vmem:[#allocation11 + $0xa8] sm:$0xff]  }
 0x172   :  { %1647 = vmatpush3.bf16.msra.mxu1 %v1748_v34  ;;  %v1782_v34 = vld [vmem:[#allocation11 + $0x28] sm:$0xff]  }
 0x173   :  { %1545 = vmatpush3.bf16.msra.mxu0 %v1749_v35  ;;  %1648 = vmatprep.subr.bf16.mxu1 %v1936_v0  ;;  %v1783_v35 = vld [vmem:[#allocation11 + $0x70] sm:$0xff]  }
 0x174   :  { %1546 = vmatprep.subr.bf16.mxu0 %v1750_v36  ;;  %v1784_v36 = vld [vmem:[#allocation11 + $0xb0] sm:$0xff]  }
 0x176   :  { %1649 = vmatpush3.bf16.msra.mxu1 %v1751_v37  ;;  %v1785_v37 = vld [vmem:[#allocation11 + $0x30] sm:$0xff]  }
 0x177   :  { %1547 = vmatpush3.bf16.msra.mxu0 %v1752_v38  ;;  %1650 = vmatprep.subr.bf16.mxu1 %v1936_v0  ;;  %v1786_v38 = vld [vmem:[#allocation11 + $0x78] sm:$0xff]  }
 0x178   :  { %1548 = vmatprep.subr.bf16.mxu0 %v1753_v39  ;;  %v1787_v39 = vld [vmem:[#allocation11 + $0xb8] sm:$0xff]  }
 0x17a   :  { %1651 = vmatpush3.bf16.msra.mxu1 %v1754_v40  ;;  %v1788_v40 = vld [vmem:[#allocation11 + $0x38] sm:$0xff]  }
 0x17b   :  { %1549 = vmatpush3.bf16.msra.mxu0 %v1755_v41  ;;  %1652 = vmatprep.subr.bf16.mxu1 %v1936_v0 }
 0x17c   :  { %1550 = vmatprep.subr.bf16.mxu0 %v1756_v42 }
 0x17e   :  { %1653 = vmatpush3.bf16.msra.mxu1 %v1757_v43 }
 0x17f   :  { %1551 = vmatpush3.bf16.msra.mxu0 %v1758_v44  ;;  %1654 = vmatprep.subr.bf16.mxu1 %v1936_v0 }
 0x180   :  { %1552 = vmatprep.subr.bf16.mxu0 %v1759_v45 }
 0x182   :  { %1655 = vmatpush3.bf16.msra.mxu1 %v1760_v46 }
 0x183   :  { %1553 = vmatpush3.bf16.msra.mxu0 %v1761_v47  ;;  %1656 = vmatprep.subr.bf16.mxu1 %v1936_v0 }
 0x184   :  { %1554 = vmatprep.subr.bf16.mxu0 %v1762_v48  ;;  %v1446_v48 = vld [vmem:[%s2206_s8] ss:$0 sm:$0xff] }
 0x186   :  { %1657 = vmatpush3.bf16.msra.mxu1 %v1763_v49 }
 0x187   :  { %1555 = vmatpush3.bf16.msra.mxu0 %v1764_v50  ;;  %1662 = vmatprep.subr.bf16.mxu1 %v1936_v0 }
 0x188   :  { %1571 = vmatprep.subr.bf16.mxu0 %v1765_v51 }
 0x23c   :  { %v711_v52 = vpop.f32.mrb[4].mxu1 }
 0x23d   :  { %v1525_v53 = vpop.f32.mrb[4].mxu0  ;;  %v1640_v54 = vpop.f32.mrb[5].mxu1 }
 0x23e   :  { %v1526_v55 = vpop.f32.mrb[5].mxu0  ;;  %v714_v57 = vpop.f32.mrb[6].mxu1 }
 0x23f   :  { %v1527_v56 = vadd.f32 %v1526_v55, %v1525_v53  ;;  %v1528_v58 = vpop.f32.mrb[6].mxu0  ;;  %v1641_v60 = vpop.f32.mrb[7].mxu1 }
 0x240   :  { %v1529_v61 = vpop.f32.mrb[7].mxu0 }
 0x241   :  { %v712_v62 = vadd.f32 %v1527_v56, %v711_v52  ;;  %v1530_v63 = vadd.f32 %v1529_v61, %v1528_v58 }
 0x243   :  { %v724_v2 = vmul.f32 %v1420_v59, %v712_v62  ;;  %v715_v3 = vadd.f32 %v1530_v63, %v714_v57 }
 0x245   :  { %v732_v4 = vadd.f32 %v1421_v1, %v724_v2  ;;  %v725_v5 = vmul.f32 %v1420_v59, %v715_v3 }
 0x247   :  { %vm734_vm3 = vcmp.gt.f32.partialorder %v732_v4, 0.0  ;;  %v736_v6 = vmul.f32 0.01, %v732_v4  ;;  %v733_v7 = vadd.f32 %v1421_v1, %v725_v5 }
 0x249   :  { %v2155_v8 = vsel %vm734_vm3, %v732_v4, %v736_v6  ;;  %vm735_vm4 = vcmp.gt.f32.partialorder %v733_v7, 0.0  ;;  %v737_v9 = vmul.f32 0.01, %v733_v7 }
 0x24a   :  { %740 = vst [vmem:[#allocation2 + $0x1] sm:$0xff] %v2155_v8 }
 0x24b   :  { %v2158_v10 = vsel %vm735_vm4, %v733_v7, %v737_v9 }
 0x24c   :  { %741 = vst [vmem:[#allocation2 + $0x9] sm:$0xff] %v2158_v10  ;;  %v751_v11 = vpack.c.bf16 %v2158_v10, %v2155_v8 }
 0x24e   :  { %977 = vmatprep.mubr.bf16.mxu0 %v751_v11 }
 0x251   :  { %v744_v12 = vld [vmem:[#allocation2] sm:$0xff] }
 0x253   :  { %v748_v15 = vld [vmem:[#allocation2 + $0x2] sm:$0xff]  ;;  %v749_v16 = vld [vmem:[#allocation2 + $0xa] sm:$0xff] }
 0x254   :  { %v745_v17 = vld [vmem:[#allocation2 + $0x8] sm:$0xff]  ;;  %v752_v18 = vpack.c.bf16 %v749_v16, %v748_v15 }
 0x255   :  { %v750_v19 = vpack.c.bf16 %v745_v17, %v744_v12 }
 0x256   :  { %1659 = vmatmul.mubr.bf16.vlgmr.msra.gmra.mrb[8].mxu1 %v752_v18  ;;  %v1473_v18 = vld [vmem:[%s2210_s12] ss:$0 sm:$0xff] }
 0x257   :  { %978 = vmatmul.mubr.bf16.vlgmr.msra.gmra.mrb[8].mxu0 %v750_v19  ;;  %1663 = vmatpush3.bf16.msra.mxu1 %v1766_v13 }
 0x258   :  { %1572 = vmatpush3.bf16.msra.mxu0 %v1767_v14  ;;  %1664 = vmatprep.subr.bf16.mxu1 %v1936_v0 }
 0x259   :  { %1678 = vmatprep.mubr.msk.bf16.mxu1 %vm1937_vm0, %v1936_v0  ;;  %1573 = vmatprep.subr.bf16.mxu0 %v1768_v20 }
 0x25b   :  { %1665 = vmatpush3.bf16.msra.mxu1 %v1769_v21 }
 0x25c   :  { %1574 = vmatpush3.bf16.msra.mxu0 %v1770_v22  ;;  %1666 = vmatprep.subr.bf16.mxu1 %v1936_v0 }
 0x25d   :  { %1575 = vmatprep.subr.bf16.mxu0 %v1771_v24 }
 0x25f   :  { %1667 = vmatpush3.bf16.msra.mxu1 %v1772_v25 }
 0x260   :  { %1576 = vmatpush3.bf16.msra.mxu0 %v1773_v28  ;;  %1668 = vmatprep.subr.bf16.mxu1 %v1936_v0 }
 0x261   :  { %1577 = vmatprep.subr.bf16.mxu0 %v1774_v29 }
 0x263   :  { %1669 = vmatpush3.bf16.msra.mxu1 %v1775_v30 }
 0x264   :  { %1578 = vmatpush3.bf16.msra.mxu0 %v1776_v31  ;;  %1670 = vmatprep.subr.bf16.mxu1 %v1936_v0 }
 0x265   :  { %1579 = vmatprep.subr.bf16.mxu0 %v1777_v32 }
 0x267   :  { %1671 = vmatpush3.bf16.msra.mxu1 %v1778_v33 }
 0x268   :  { %1580 = vmatpush3.bf16.msra.mxu0 %v1779_v26  ;;  %1672 = vmatprep.subr.bf16.mxu1 %v1936_v0 }
 0x269   :  { %1581 = vmatprep.subr.bf16.mxu0 %v1780_v23 }
 0x26b   :  { %1673 = vmatpush3.bf16.msra.mxu1 %v1781_v27 }
 0x26c   :  { %1582 = vmatpush3.bf16.msra.mxu0 %v1782_v34  ;;  %1674 = vmatprep.subr.bf16.mxu1 %v1936_v0 }
 0x26d   :  { %1583 = vmatprep.subr.bf16.mxu0 %v1783_v35 }
 0x26f   :  { %1675 = vmatpush3.bf16.msra.mxu1 %v1784_v36 }
 0x270   :  { %1584 = vmatpush3.bf16.msra.mxu0 %v1785_v37  ;;  %1676 = vmatprep.subr.bf16.mxu1 %v1936_v0  ;;  %v1447_v0 = vld [vmem:[%s2207_s9] ss:$0 sm:$0xff] }
 0x271   :  { %1585 = vmatprep.subr.bf16.mxu0 %v1786_v38 }
 0x273   :  { %1677 = vmatpush3.bf16.msra.mxu1 %v1787_v39 }
 0x274   :  { %1586 = vmatpush3.bf16.msra.mxu0 %v1788_v40 }
 0x329   :  { %v1020_v41 = vpop.f32.mrb[8].mxu1 }
 0x32a   :  { %v1556_v42 = vpop.f32.mrb[8].mxu0  ;;  %v1660_v43 = vpop.f32.mrb[9].mxu1 }
 0x32b   :  { %v1557_v44 = vpop.f32.mrb[9].mxu0  ;;  %v1023_v46 = vpop.f32.mrb[10].mxu1 }
 0x32c   :  { %v1558_v45 = vadd.f32 %v1557_v44, %v1556_v42  ;;  %v1559_v47 = vpop.f32.mrb[10].mxu0  ;;  %v1661_v49 = vpop.f32.mrb[11].mxu1 }
 0x32d   :  { %v1560_v50 = vpop.f32.mrb[11].mxu0 }
 0x32e   :  { %v1021_v51 = vadd.f32 %v1558_v45, %v1020_v41  ;;  %v1561_v52 = vadd.f32 %v1560_v50, %v1559_v47 }
 0x330   :  { %v1033_v53 = vmul.f32 %v1446_v48, %v1021_v51  ;;  %v1024_v54 = vadd.f32 %v1561_v52, %v1023_v46 }
 0x332   :  { %v1041_v55 = vadd.f32 %v1447_v0, %v1033_v53  ;;  %v1034_v56 = vmul.f32 %v1446_v48, %v1024_v54 }
 0x334   :  { %vm1043_vm5 = vcmp.gt.f32.partialorder %v1041_v55, 0.0  ;;  %v1045_v57 = vmul.f32 0.01, %v1041_v55  ;;  %v1042_v58 = vadd.f32 %v1447_v0, %v1034_v56 }
 0x336   :  { %v1047_v59 = vsel %vm1043_vm5, %v1041_v55, %v1045_v57  ;;  %vm1044_vm6 = vcmp.gt.f32.partialorder %v1042_v58, 0.0  ;;  %v1046_v60 = vmul.f32 0.01, %v1042_v58 }
 0x337   :  { %v1049_v61 = vadd.f32 %v1047_v59, %v2155_v8 }
 0x338   :  { %v1048_v62 = vsel %vm1044_vm6, %v1042_v58, %v1046_v60 }
 0x339   :  { %1051 = vst [vmem:[#allocation2 + $0x1] sm:$0xff] %v1049_v61  ;;  %v1050_v63 = vadd.f32 %v1048_v62, %v2158_v10  ;;  %v1472_v10 = vld [vmem:[%s2209_s11] ss:$0 sm:$0xff] }
 0x33b   :  { %1052 = vst [vmem:[#allocation2 + $0x9] sm:$0xff] %v1050_v63 }
 0x342   :  { %v1057_v1 = vld [vmem:[#allocation2 + $0x1] ss:$2 sm:$0xff]  ;;  %v1059_v2 = vld [vmem:[#allocation2 + $0x2] ss:$2 sm:$0xff] }
 0x343   :  { %v1055_v3 = vld [vmem:[#allocation2] ss:$2 sm:$0xff]  ;;  %v1061_v4 = vpack.c.bf16 %v1057_v1, %v1057_v1  ;;  %v1062_v5 = vpack.c.bf16 %v1059_v2, %v1059_v2 }
 0x344   :  { %v1060_v6 = vpack.c.bf16 %v1055_v3, %v1055_v3 }
 0x345   :  { %1287 = vmatprep.mubr.bf16.mxu0 %v1061_v4  ;;  %1679 = vmatmul.mubr.bf16.vlgmr.msra.gmra.mrb[12].mxu1 %v1062_v5 }
 0x346   :  { %1288 = vmatmul.mubr.bf16.vlgmr.msra.gmra.mrb[12].mxu0 %v1060_v6 }
 0x418   :  { %v1329_v7 = vpop.f32.mrb[12].mxu1 }
 0x419   :  { %v1587_v9 = vpop.f32.mrb[12].mxu0  ;;  %v1680_v11 = vpop.f32.mrb[13].mxu1 }
 0x41a   :  { %v1588_v12 = vpop.f32.mrb[13].mxu0  ;;  %v1332_v13 = vpop.f32.mrb[14].mxu1 }
 0x41b   :  { %v1589_v8 = vadd.f32 %v1588_v12, %v1587_v9  ;;  %v1590_v14 = vpop.f32.mrb[14].mxu0  ;;  %v1681_v15 = vpop.f32.mrb[15].mxu1 }
 0x41c   :  { %v1591_v16 = vpop.f32.mrb[15].mxu0 }
 0x41d   :  { %v1330_v17 = vadd.f32 %v1589_v8, %v1329_v7 }
 0x41f   :  { %v1341_v19 = vmul.f32 %v1472_v10, %v1330_v17 }
 0x421   :  { %v1348_v20 = vadd.f32 %v1473_v18, %v1341_v19 }
 0x423   :  { %vm1349_vm7 = vcmp.gt.f32.partialorder %v1348_v20, 0.0  ;;  %v1350_v21 = vmul.f32 0.01, %v1348_v20 }
 0x425   :  { %v1351_v22 = vsel %vm1349_vm7, %v1348_v20, %v1350_v21 }
 0x426   :  { %1352 = vst [vmem:[#allocation12] sm:$0xff] %v1351_v22 }
 0x427   :  { %1910 = shalt.err (!%p1907_p2)
}
 0x428   :  { %s1911_s12 = scalar_lea.hbm %s2211_s13, 128 }
 0x429   :  { %p1912_p3 = scmp.ne.s32.totalorder %s2211_s13, %s1911_s12  ;;  %p1915_p4 = scmp.lt.u32.totalorder %s1911_s12, %s2211_s13 }
 0x42b   :  { %p1917_p5 = pnand %p1915_p4, %p1912_p3 }
 0x42d   :  { %1920 = shalt.err (!%p1917_p5)
}
 0x42e   :  { %1362 = dma.vmem_to_hbm [thread:$0]  %s1360_s29, 128, %s2211_s13, [#allocation5]  }
 0x42f   :  { %1927 = dma.done.wait [#allocation5], 128  }
 0x430   :  { %1928 = vsyncadd [#allocation5], 4294967168 }
 0x431   :  { %1366 = vsyncpa [#allocation4], 1 }
 0x432   :  { %1367 = vsyncpa [#allocation7], 1 }
 0x433   :  { %1368 = vsyncpa [#allocation10], 1 }
 0x434   :  { %1369 = vsyncpa [#allocation5], 1 }

</bundles_post_ra>
